<compile_context>
chip_gen: v7x
topology: tpu7x:2x2x1
jax: 0.10.0
libtpu: 0.0.40
codegen_flags: <defaults>
</compile_context>

<pallas_src>
import functools
import math

import jax
import jax.numpy as jnp
from jax.experimental import pallas as pl
from jax.experimental.pallas import tpu as pltpu

_VMEM_LIMIT = 48 * 1024 * 1024          # raised scoped-VMEM limit (all chips)
_VMEM_BUDGET = 24 * 1024 * 1024         # target double-buffered working set


def _round_up(x: int, m: int) -> int:
    return ((x + m - 1) // m) * m


def _cdiv(a: int, b: int) -> int:
    return -(-a // b)


def _row_tile(total_rows: int, cap: int) -> int:
    """Largest multiple of 8 that divides total_rows and is <= cap."""
    best = 8
    d = 8
    while d <= min(total_rows, cap):
        if total_rows % d == 0:
            best = d
        d += 8
    return best


def _pick_tiles(Bp0: int, Np0: int, Kp: int, tb_cap: int, tn_cap: int):
    """Pick (tb, tn) respecting sublane/lane quanta and the VMEM budget."""
    tb_cap = max(8, tb_cap - tb_cap % 8)
    tn_cap = max(128, tn_cap - tn_cap % 128)
    while True:
        nbt = _cdiv(Bp0, tb_cap)
        tb = _round_up(_cdiv(Bp0, nbt), 8)
        nct = _cdiv(Np0, tn_cap)
        tn = _round_up(_cdiv(Np0, nct), 128)
        # double-buffered: bf16 x tile + bf16 W tile + f32 out tile
        need = 2 * (tb * Kp * 2 + tn * Kp * 2 + tb * tn * 4)
        if need <= _VMEM_BUDGET or (tb_cap <= 8 and tn_cap <= 128):
            return tb, tn
        if tn_cap > 128:
            tn_cap //= 2
        else:
            tb_cap //= 2


# --------------------------------------------------------------------------
# Prologue kernel: row-wise L2 normalization (f32 math) emitting bf16.
# Used once for x and once for W, so the main kernel streams 2 B/elem tiles.
# --------------------------------------------------------------------------
def _rownorm_bf16_kernel(a_ref, o_ref):
    a = a_ref[...]                                       # (rows, Kp) f32
    ss = jnp.sum(a * a, axis=-1, keepdims=True)
    inv = jax.lax.rsqrt(jnp.maximum(ss, 1e-24))          # == 1 / max(||a||,1e-12)
    o_ref[...] = (a * inv).astype(o_ref.dtype)


def _normalize_rows_bf16(a_pad, row_tile):
    R, C = a_pad.shape
    return pl.pallas_call(
        _rownorm_bf16_kernel,
        out_shape=jax.ShapeDtypeStruct((R, C), jnp.bfloat16),
        grid=(R // row_tile,),
        in_specs=[pl.BlockSpec((row_tile, C), lambda i: (i, 0))],
        out_specs=pl.BlockSpec((row_tile, C), lambda i: (i, 0)),
        compiler_params=pltpu.CompilerParams(
            dimension_semantics=("parallel",),
            vmem_limit_bytes=_VMEM_LIMIT),
    )(a_pad)


# --------------------------------------------------------------------------
# Main kernel: bf16 cosine matmul (f32 acc) on pre-normalized operands,
# target-only angular margin, one-hot select, fused scale.
# Grid is (class_tiles, batch_tiles): batch innermost => the W tile block
# index is constant across consecutive steps and stays resident in VMEM.
# --------------------------------------------------------------------------
def _arcface_kernel(x_ref, w_ref, lbl_ref, out_ref, *,
                    scale, cos_m, sin_m, th, mm, easy_margin):
    j = pl.program_id(0)                                  # class-tile index

    # cosine = x_n @ w_n.T -- contract the stored K axis of both bf16 operands,
    # f32 accumulator, lane-dense (tb, tn) output.
    cos = jax.lax.dot_general(
        x_ref[...], w_ref[...], (((1,), (1,)), ((), ())),
        preferred_element_type=jnp.float32)               # (tb, tn) f32

    tb, tn = cos.shape

    # one-hot mask for this class tile (pure VPU compare)
    col = jax.lax.broadcasted_iota(jnp.int32, (tb, tn), 1) + j * tn
    mask = col == lbl_ref[...]                            # (tb, tn) bool

    # target cosine per row; margin math only on (tb, 1) in f32
    tcos = jnp.sum(jnp.where(mask, cos, 0.0), axis=-1, keepdims=True)
    tsin = jnp.sqrt(jnp.clip(1.0 - tcos * tcos, 0.0, 1.0))
    phi = tcos * cos_m - tsin * sin_m
    if easy_margin:
        phi = jnp.where(tcos > 0.0, phi, tcos)
    else:
        phi = jnp.where(tcos > th, phi, tcos - mm)

    # select + fused scale, single lane-dense store
    out_ref[...] = (jnp.where(mask, phi, cos) * scale).astype(out_ref.dtype)


# --------------------------------------------------------------------------
# Wrapper
# --------------------------------------------------------------------------
def arcface_forward(x, weight, label, *, scale=45.0, margin=0.7,
                    easy_margin=False, tb_cap=256, tn_cap=1024):
    """ArcFace forward: x (B, K), weight (N, K), label (B,) -> (B, N) f32."""
    B, K = x.shape
    N, K2 = weight.shape
    assert K == K2

    cos_m = math.cos(margin)
    sin_m = math.sin(margin)
    th = math.cos(math.pi - margin)
    mm = math.sin(math.pi - margin) * margin

    Kp = _round_up(K, 128)
    Bp0 = _round_up(B, 8)
    Np0 = _round_up(N, 128)
    tb, tn = _pick_tiles(Bp0, Np0, Kp, tb_cap, tn_cap)
    Bp = _round_up(Bp0, tb)
    Np = _round_up(Np0, tn)

    # ---- conditional zero-padding (skipped entirely when already aligned) ---
    if (B, K) == (Bp, Kp):
        xp = x.astype(jnp.float32)
    else:
        xp = jnp.zeros((Bp, Kp), jnp.float32).at[:B, :K].set(x.astype(jnp.float32))
    if (N, K) == (Np, Kp):
        wp = weight.astype(jnp.float32)
    else:
        wp = jnp.zeros((Np, Kp), jnp.float32).at[:N, :K].set(weight.astype(jnp.float32))
    if B == Bp:
        lblp = label.astype(jnp.int32).reshape(Bp, 1)
    else:
        lblp = jnp.zeros((Bp, 1), jnp.int32).at[:B, 0].set(label.astype(jnp.int32))

    # ---- prologues: L2-normalize rows ONCE and emit bf16 MXU operands -------
    xn = _normalize_rows_bf16(xp, _row_tile(Bp, 512))
    wn = _normalize_rows_bf16(wp, _row_tile(Np, 512))

    # ---- main kernel: class-outer, batch-inner grid --------------------------
    kernel = functools.partial(
        _arcface_kernel, scale=scale, cos_m=cos_m, sin_m=sin_m,
        th=th, mm=mm, easy_margin=easy_margin)

    cost = pl.CostEstimate(
        flops=2 * Bp * Np * Kp,
        transcendentals=Bp * (Np // tn),
        bytes_accessed=Bp * Kp * 2 + Np * Kp * 2 + Bp * 4 + Bp * Np * 4)

    out = pl.pallas_call(
        kernel,
        out_shape=jax.ShapeDtypeStruct((Bp, Np), jnp.float32),
        grid=(Np // tn, Bp // tb),                        # batch axis innermost
        in_specs=[
            pl.BlockSpec((tb, Kp), lambda j, i: (i, 0)),  # normalized bf16 x tile
            pl.BlockSpec((tn, Kp), lambda j, i: (j, 0)),  # resident bf16 W tile
            pl.BlockSpec((tb, 1), lambda j, i: (i, 0)),   # labels for batch tile
        ],
        out_specs=pl.BlockSpec((tb, tn), lambda j, i: (i, j)),
        compiler_params=pltpu.CompilerParams(
            dimension_semantics=("parallel", "parallel"),
            vmem_limit_bytes=_VMEM_LIMIT),
        cost_estimate=cost,
    )(xn, wn, lblp)

    if Bp != B or Np != N:
        out = out[:B, :N]
    return out


# --------------------------------------------------------------------------
# Pure-JAX reference (mirrors the PyTorch forward) for correctness checks.
# --------------------------------------------------------------------------
def arcface_reference(x, weight, label, *, scale, margin, easy_margin):
    cos_m = math.cos(margin)
    sin_m = math.sin(margin)
    th = math.cos(math.pi - margin)
    mm = math.sin(math.pi - margin) * margin
    xn = x / jnp.maximum(jnp.linalg.norm(x, axis=-1, keepdims=True), 1e-12)
    wn = weight / jnp.maximum(jnp.linalg.norm(weight, axis=-1, keepdims=True), 1e-12)
    cosine = xn @ wn.T
    sine = jnp.sqrt(jnp.clip(1.0 - cosine * cosine, 0.0, 1.0))
    phi = cosine * cos_m - sine * sin_m
    if easy_margin:
        phi = jnp.where(cosine > 0.0, phi, cosine)
    else:
        phi = jnp.where(cosine > th, phi, cosine - mm)
    one_hot = jax.nn.one_hot(label, weight.shape[0], dtype=cosine.dtype)
    return (one_hot * phi + (1.0 - one_hot) * cosine) * scale


if __name__ == "__main__":
    key = jax.random.PRNGKey(0)
    k1, k2, k3 = jax.random.split(key, 3)

    B, in_features, out_features = 18, 40, 200
    scale_, margin_ = 45.0, 0.7

    x = jax.random.normal(k1, (B, in_features), jnp.float32)
    limit = math.sqrt(6.0 / (in_features + out_features))     # xavier_uniform
    weight = jax.random.uniform(k2, (out_features, in_features), jnp.float32,
                                -limit, limit)
    label = jax.random.randint(k3, (B,), 0, out_features, jnp.int32)

    # --- config A: default (large) tiles, standard margin ---------------------
    ref = arcface_reference(x, weight, label, scale=scale_, margin=margin_,
                            easy_margin=False)
    out = arcface_forward(x, weight, label, scale=scale_, margin=margin_,
                          easy_margin=False)
    out = jax.block_until_ready(out)
    assert out.shape == (B, out_features)
    err = float(jnp.max(jnp.abs(out - ref)))
    # bf16 matmul operands (f32 accumulator) -> loose-but-safe tolerance.
    assert jnp.allclose(out, ref, atol=0.5, rtol=0.02), f"max_err={err}"

    # --- config B: tiny forced tiles (multi-tile grid path), easy_margin ------
    ref_em = arcface_reference(x, weight, label, scale=scale_, margin=margin_,
                               easy_margin=True)
    out_em = arcface_forward(x, weight, label, scale=scale_, margin=margin_,
                             easy_margin=True, tb_cap=8, tn_cap=128)
    out_em = jax.block_until_ready(out_em)
    assert out_em.shape == (B, out_features)
    err_em = float(jnp.max(jnp.abs(out_em - ref_em)))
    assert jnp.allclose(out_em, ref_em, atol=0.5, rtol=0.02), f"max_err={err_em}"

    print("KERNEL_OK")
</pallas_src>

<mosaic_0001>
module attributes {stable_mosaic.version = 11 : i64} {
  func.func @_rownorm_bf16_kernel(%arg0: i32, %arg1: memref<24x128xf32, #tpu.memory_space<vmem>>, %arg2: memref<24x128xbf16, #tpu.memory_space<vmem>>) attributes {dimension_semantics = [#tpu.dimension_semantics<parallel>], iteration_bounds = array<i64: 1>, scalar_prefetch = 0 : i64, scratch_operands = 0 : i64, tpu.core_type = #tpu.core_type<tc>, window_params = [{transform_indices = @transform_0, window_bounds = array<i64: 24, 128>}, {transform_indices = @transform_1, window_bounds = array<i64: 24, 128>}]} {
    %c0 = arith.constant 0 : index
    %c0_0 = arith.constant 0 : index
    %0 = vector.load %arg1[%c0, %c0_0] : memref<24x128xf32, #tpu.memory_space<vmem>>, vector<24x128xf32>
    %1 = arith.mulf %0, %0 : vector<24x128xf32>
    %cst = arith.constant dense<0.000000e+00> : vector<24xf32>
    %2 = vector.multi_reduction <add>, %1, %cst [1] : vector<24x128xf32> to vector<24xf32>
    %3 = vector.shape_cast %2 : vector<24xf32> to vector<24x1xf32>
    %cst_1 = arith.constant 1.000000e-24 : f32
    %4 = vector.broadcast %cst_1 : f32 to vector<24x1xf32>
    %5 = arith.maximumf %3, %4 : vector<24x1xf32>
    %6 = math.rsqrt %5 : vector<24x1xf32>
    %7 = vector.broadcast %6 : vector<24x1xf32> to vector<24x128xf32>
    %8 = arith.mulf %0, %7 : vector<24x128xf32>
    %9 = arith.truncf %8 : vector<24x128xf32> to vector<24x128xbf16>
    %c0_2 = arith.constant 0 : index
    %c0_3 = arith.constant 0 : index
    %10 = vector.load %arg2[%c0_2, %c0_3] : memref<24x128xbf16, #tpu.memory_space<vmem>>, vector<24x128xbf16>
    tpu.vector_store %arg2[%c0_2, %c0_3], %9 {strides = array<i32>} : memref<24x128xbf16, #tpu.memory_space<vmem>>, vector<24x128xbf16>,
    return
  }
  func.func @transform_0(%arg0: i32) -> (i32, i32) {
    %c0_i32 = arith.constant 0 : i32
    %c0_i32_0 = arith.constant 0 : i32
    return %arg0, %c0_i32 : i32, i32
  }
  func.func @transform_1(%arg0: i32) -> (i32, i32) {
    %c0_i32 = arith.constant 0 : i32
    %c0_i32_0 = arith.constant 0 : i32
    return %arg0, %c0_i32 : i32, i32
  }
}

</mosaic_0001>

<bundles_post_ra>
// kernel: tpu_custom_call.1
= control target key start
LH: loop header
LB: loop body
LE: loop exit
PB: predicated region body
PF: predicated region fallthrough
CT: control target
= control target key end

     0   :  { %6 = vsyncpa [#allocation3], 0  ;;  %s188_s0 = inlined_call_operand.hbm [shape: f32[24,128], index: 0, kind: input, shape index: {}]   ;;  %s189_s1 = inlined_call_operand.hbm [shape: bf16[24,128], index: 1, kind: output, shape index: {}]  }
   0x1   :  { %7 = vsyncpa [#allocation4], 0  ;;  %s148_s6 = smov [#allocation2]   ;;  %s100_s10 = scalar_lea.hbm %s188_s0, 384 }
   0x2   :  { %s13_s7 = sshll.u32 %s148_s6, 4  ;;  %p101_p0 = scmp.ne.s32.totalorder %s188_s0, %s100_s10  ;;  %s14_s7 = int_to_ptr.vmem [resolvable:$true] %s13_s7 }
   0x3   :  { %p104_p1 = scmp.lt.u32.totalorder %s100_s10, %s188_s0 }
   0x5   :  { %p106_p2 = pnand %p104_p1, %p101_p0 }
   0x7   :  { %109 = shalt.err (!%p106_p2)
}
   0x8   :  { %s110_s15 = scalar_lea.vmem %s14_s7, 384  ;;  %p115_p4 = scmp.lt.s32.totalorder %s14_s7, %s14_s7 }
   0x9   :  { %p111_p3 = scmp.ne.s32.totalorder %s14_s7, %s110_s15  ;;  %p116_p5 = scmp.lt.s32.totalorder %s110_s15, %s110_s15 }
   0xb   :  { %p117_p6 = por %p116_p5, %p115_p4 }
   0xd   :  { %p118_p7 = pnand %p117_p6, %p111_p3 }
   0xf   :  { %121 = shalt.err (!%p118_p7)
}
  0x10   :  { %s149_s16 = smov 128   ;;  %s150_s17 = smov 8  }
  0x11   :  { %19 = dma.hbm_to_vmem [thread:$0]  %s188_s0, 384, %s14_s7, [#allocation3], %s149_s16, %s149_s16, %s150_s17  }
  0x12   :  { %144 = dma.done.wait [#allocation3], 384  }
  0x13   :  { %145 = vsyncadd [#allocation3], 4294966912  ;;  %v23_v0 = vld [vmem:[#allocation2] sm:$0xff]  ;;  %v25_v1 = vld [vmem:[#allocation2 + $0x10] sm:$0xff]  ;;  %s151_s0 = smov [#allocation5]  }
  0x14   :  { %v24_v2 = vld [vmem:[#allocation2 + $0x8] sm:$0xff]  ;;  %v26_v3 = vmul.f32 %v23_v0, %v23_v0  ;;  %v28_v4 = vmul.f32 %v25_v1, %v25_v1  ;;  %s65_s20 = sshll.u32 %s151_s0, 4  ;;  %s66_s20 = int_to_ptr.vmem [resolvable:$true] %s65_s20 }
  0x15   :  { %v27_v5 = vmul.f32 %v24_v2, %v24_v2  ;;  %s122_s21 = scalar_lea.vmem %s66_s20, 192  ;;  %p127_p9 = scmp.lt.s32.totalorder %s66_s20, %s66_s20 }
  0x16   :  { %29 = vadd.xlane.f32.xlu0 %v26_v3  ;;  %33 = vadd.xlane.f32.xlu1 %v28_v4  ;;  %p123_p8 = scmp.ne.s32.totalorder %s66_s20, %s122_s21  ;;  %p128_p10 = scmp.lt.s32.totalorder %s122_s21, %s122_s21 }
  0x18   :  { %p129_p11 = por %p128_p10, %p127_p9 }
  0x1a   :  { %31 = vadd.xlane.f32.xlu0 %v27_v5  ;;  %p130_p12 = pnand %p129_p11, %p123_p8 }
  0xa3   :  { %v30_v6 = vpop.xlane.xlu0 %29  ;;  %v34_v7 = vpop.xlane.xlu1 %33 }
  0xa4   :  { %v35_v8 = vmax.f32 %v30_v6, 1e-24  ;;  %v37_v9 = vmax.f32 %v34_v7, 1e-24 }
  0xa6   :  { %94 = vrsqrt.f32 %v37_v9 }
  0xa7   :  { %v32_v10 = vpop.xlane.xlu0 %31  ;;  %96 = vrsqrt.f32 %v35_v8 }
  0xa8   :  { %v36_v11 = vmax.f32 %v32_v10, 1e-24 }
  0xaa   :  { %98 = vrsqrt.f32 %v36_v11 }
  0xb0   :  { %v95_v12 = vpop.eup %94 }
  0xb1   :  { %v97_v13 = vpop.eup %96  ;;  %v43_v14 = vmul.f32 %v95_v12, %v25_v1 }
  0xb2   :  { %v41_v17 = vmul.f32 %v97_v13, %v23_v0 }
  0xb3   :  { %v82_v16 = vpack.c.bf16 %v43_v14, %v43_v14 }
  0xb4   :  { %v99_v15 = vpop.eup %98 }
  0xb5   :  { %v42_v18 = vmul.f32 %v99_v15, %v24_v2  ;;  %59 = vst [vmem:[#allocation5 + $0x8] sm:$0xf] %v82_v16 }
  0xb7   :  { %v86_v19 = vpack.c.bf16 %v42_v18, %v41_v17 }
  0xb9   :  { %87 = vst [vmem:[#allocation5] sm:$0xff] %v86_v19  }
  0xba   :  { %133 = shalt.err (!%p130_p12)
}
  0xbb   :  { %s134_s24 = scalar_lea.hbm %s189_s1, 192 }
  0xbc   :  { %p135_p13 = scmp.ne.s32.totalorder %s189_s1, %s134_s24  ;;  %p138_p0 = scmp.lt.u32.totalorder %s134_s24, %s189_s1 }
  0xbe   :  { %p140_p1 = pnand %p138_p0, %p135_p13 }
  0xc0   :  { %143 = shalt.err (!%p140_p1)
}
  0xc1   :  { %s152_s29 = smov 64   ;;  %s153_s30 = smov 4  }
  0xc2   :  { %71 = dma.vmem_to_hbm [thread:$0]  %s66_s20, 192, %s189_s1, [#allocation4], %s152_s29, %s152_s29, %s153_s30  }
  0xc3   :  { %146 = dma.done.wait [#allocation4], 192  }
  0xc4   :  { %147 = vsyncadd [#allocation4], 4294967104 }
  0xc5   :  { %75 = vsyncpa [#allocation3], 1 }
  0xc6   :  { %76 = vsyncpa [#allocation4], 1 }

</bundles_post_ra>
